<compile_context>
chip_gen: v5e
topology: v5e:2x2
jax: 0.10.0
libtpu: 0.0.40
codegen_flags: <defaults>
</compile_context>

<pallas_src>
import jax
import jax.numpy as jnp
from jax.experimental import pallas as pl
from jax.experimental.pallas import tpu as pltpu


def _lr_kernel(x_ref, w_ref, b_ref, out_ref):
    # x_ref: [TILE_N, D] VMEM, w_ref: [1, D] VMEM (lane-dense), b_ref: [1,1] SMEM
    x = x_ref[...]
    w = w_ref[...]
    b = b_ref[0, 0]
    # VPU multiply + lane reduce (XLU) -> per-row dot product; bias; sigmoid (EUP).
    score = jnp.sum(x * w, axis=-1, keepdims=True) + b
    out_ref[...] = (1.0 / (1.0 + jnp.exp(-score))).astype(out_ref.dtype)


def _round_up(x, m):
    return ((x + m - 1) // m) * m


def logistic_forward(x, w, b, *, tile_n=None):
    """x: [N, D] f32, w: [D, 1] f32, b: [1] f32  ->  [N, 1] f32 = sigmoid(x @ w + b)."""
    N, D = x.shape
    x = x.astype(jnp.float32)
    w_row = jnp.reshape(w, (1, D)).astype(jnp.float32)   # lane-dense weight row
    b_2d = jnp.reshape(b, (1, 1)).astype(jnp.float32)

    if tile_n is None:
        # Keep one x buffer <= ~6 MiB so double-buffering fits the v5e 16 MiB
        # scoped-VMEM default (and trivially fits v6e / v7x).
        budget_bytes = 6 * 1024 * 1024
        tile_n = max(8, min(2048, (budget_bytes // (D * 4)) // 8 * 8))
    tile_n = min(tile_n, _round_up(N, 8))

    grid = (pl.cdiv(N, tile_n),)

    out = pl.pallas_call(
        _lr_kernel,
        out_shape=jax.ShapeDtypeStruct((N, 1), jnp.float32),
        grid=grid,
        in_specs=[
            pl.BlockSpec((tile_n, D), lambda i: (i, 0)),          # stream x row-tiles
            pl.BlockSpec((1, D), lambda i: (0, 0)),               # w: VMEM-resident
            pl.BlockSpec(memory_space=pltpu.MemorySpace.SMEM),    # b: scalar in SMEM
        ],
        out_specs=pl.BlockSpec((tile_n, 1), lambda i: (i, 0)),
        compiler_params=pltpu.CompilerParams(
            dimension_semantics=("parallel",)),   # shard row tiles across v7x TCs
    )(x, w_row, b_2d)

    return out


if __name__ == "__main__":
    input_dim = 2

    key = jax.random.PRNGKey(0)
    kx, kw, kb, kx2 = jax.random.split(key, 4)

    # Spec-sized check (ModelLR with input_dim=2, small batch). The module's
    # __init__ uses zeros; small random params keep the sigmoid non-degenerate.
    N = 8
    x = jax.random.normal(kx, (N, input_dim), dtype=jnp.float32)
    w = 0.1 * jax.random.normal(kw, (input_dim, 1), dtype=jnp.float32)
    b = 0.1 * jax.random.normal(kb, (1,), dtype=jnp.float32)

    out = jax.block_until_ready(logistic_forward(x, w, b))
    ref = jax.nn.sigmoid(x @ w + b)
    assert out.shape == (N, 1)
    assert jnp.allclose(out, ref, atol=1e-5, rtol=1e-5), (out, ref)

    # Multi-tile / ragged-last-tile check (exercises the pipelined grid + masking).
    N2 = 1000
    x2 = jax.random.normal(kx2, (N2, input_dim), dtype=jnp.float32)
    out2 = jax.block_until_ready(logistic_forward(x2, w, b, tile_n=256))
    ref2 = jax.nn.sigmoid(x2 @ w + b)
    assert out2.shape == (N2, 1)
    assert jnp.allclose(out2, ref2, atol=1e-5, rtol=1e-5)

    print("KERNEL_OK")
</pallas_src>

<mosaic_0001>
module attributes {stable_mosaic.version = 11 : i64} {
  func.func @_lr_kernel(%arg0: i32, %arg1: memref<8x2xf32, #tpu.memory_space<vmem>>, %arg2: memref<1x2xf32, #tpu.memory_space<vmem>>, %arg3: memref<1x1xf32, #tpu.memory_space<smem>>, %arg4: memref<8x1xf32, #tpu.memory_space<vmem>>) attributes {dimension_semantics = [#tpu.dimension_semantics<parallel>], iteration_bounds = array<i64: 1>, scalar_prefetch = 0 : i64, scratch_operands = 0 : i64, tpu.core_type = #tpu.core_type<tc>, window_params = [{transform_indices = @transform_0, window_bounds = array<i64: 8, 2>}, {pipeline_mode = #tpu.pipeline_mode<synchronous>, transform_indices = @transform_1, window_bounds = array<i64: 1, 2>}, {transform_indices = @transform_2, window_bounds = array<i64: 1, 1>}, {transform_indices = @transform_3, window_bounds = array<i64: 8, 1>}]} {
    %c0 = arith.constant 0 : index
    %c0_0 = arith.constant 0 : index
    %0 = vector.load %arg1[%c0, %c0_0] : memref<8x2xf32, #tpu.memory_space<vmem>>, vector<8x2xf32>
    %c0_1 = arith.constant 0 : index
    %c0_2 = arith.constant 0 : index
    %1 = vector.load %arg2[%c0_1, %c0_2] : memref<1x2xf32, #tpu.memory_space<vmem>>, vector<1x2xf32>
    %c0_3 = arith.constant 0 : index
    %c0_4 = arith.constant 0 : index
    %2 = memref.load %arg3[%c0_3, %c0_4] : memref<1x1xf32, #tpu.memory_space<smem>>
    %3 = vector.broadcast %1 : vector<1x2xf32> to vector<8x2xf32>
    %4 = arith.mulf %0, %3 : vector<8x2xf32>
    %cst = arith.constant dense<0.000000e+00> : vector<8xf32>
    %5 = vector.multi_reduction <add>, %4, %cst [1] : vector<8x2xf32> to vector<8xf32>
    %6 = vector.shape_cast %5 : vector<8xf32> to vector<8x1xf32>
    %7 = vector.broadcast %2 : f32 to vector<8x1xf32>
    %8 = arith.addf %6, %7 : vector<8x1xf32>
    %cst_5 = arith.constant 0.000000e+00 : f32
    %9 = vector.broadcast %cst_5 : f32 to vector<8x1xf32>
    %10 = arith.subf %9, %8 : vector<8x1xf32>
    %11 = math.exp %10 : vector<8x1xf32>
    %cst_6 = arith.constant 1.000000e+00 : f32
    %12 = vector.broadcast %cst_6 : f32 to vector<8x1xf32>
    %13 = arith.addf %12, %11 : vector<8x1xf32>
    %cst_7 = arith.constant 1.000000e+00 : f32
    %14 = vector.broadcast %cst_7 : f32 to vector<8x1xf32>
    %15 = arith.divf %14, %13 : vector<8x1xf32>
    %c0_8 = arith.constant 0 : index
    %c0_9 = arith.constant 0 : index
    %16 = vector.load %arg4[%c0_8, %c0_9] : memref<8x1xf32, #tpu.memory_space<vmem>>, vector<8x1xf32>
    tpu.vector_store %arg4[%c0_8, %c0_9], %15 {strides = array<i32>} : memref<8x1xf32, #tpu.memory_space<vmem>>, vector<8x1xf32>,
    return
  }
  func.func @transform_0(%arg0: i32) -> (i32, i32) {
    %c0_i32 = arith.constant 0 : i32
    %c0_i32_0 = arith.constant 0 : i32
    return %arg0, %c0_i32 : i32, i32
  }
  func.func @transform_1(%arg0: i32) -> (i32, i32) {
    %c0_i32 = arith.constant 0 : i32
    %c0_i32_0 = arith.constant 0 : i32
    %c0_i32_1 = arith.constant 0 : i32
    return %c0_i32, %c0_i32_0 : i32, i32
  }
  func.func @transform_2(%arg0: i32) -> (i32, i32) {
    %c0_i32 = arith.constant 0 : i32
    %c0_i32_0 = arith.constant 0 : i32
    %c0_i32_1 = arith.constant 0 : i32
    return %c0_i32, %c0_i32_0 : i32, i32
  }
  func.func @transform_3(%arg0: i32) -> (i32, i32) {
    %c0_i32 = arith.constant 0 : i32
    %c0_i32_0 = arith.constant 0 : i32
    return %arg0, %c0_i32 : i32, i32
  }
}

</mosaic_0001>

<bundles_post_ra>
// kernel: tpu_custom_call.1
= control target key start
LH: loop header
LB: loop body
LE: loop exit
PB: predicated region body
PF: predicated region fallthrough
CT: control target
= control target key end

     0   :  { %vm22_vm0 = vcmask 15360   ;;  %vm47_vm4 = vcmask 7168   ;;  %s90_s0 = inlined_call_operand.vmem [shape: f32[8,2], index: 0, kind: input, shape index: {}]   ;;  %s91_s1 = inlined_call_operand.vmem [shape: f32[1,2], index: 1, kind: input, shape index: {}]   ;;  %s92_s2 = inlined_call_operand.<no memory space> [shape: f32[1,1], index: 2, kind: input, shape index: {}]   ;;  %s93_s3 = inlined_call_operand.vmem [shape: f32[8,1], index: 3, kind: output, shape index: {}]  }
   0x1   :  { %v15_v0 = vld [vmem:[%s90_s0] sm:$0xff]  ;;  %v26_v4 = vstv %s92_s2 }
   0x2   :  { %v53_v1 = vld [vmem:[%s91_s1] ss:$0 sm:$0xff] }
   0x3   :  { %v21_v2 = vmul.f32 %v53_v1, %v15_v0 }
   0x5   :  { %v23_v3 = vsel %vm22_vm0, %v21_v2, 0.0 }
   0x6   :  { %24 = vadd.xlane.f32.xlu0 %v23_v3 }
  0x79   :  { %v25_v5 = vpop.xlane.xlu0 %24 }
  0x7a   :  { %v27_v6 = vadd.f32 %v26_v4, %v25_v5 }
  0x7c   :  { %v28_v7 = vsub.f32 0.0, %v27_v6 }
  0x7e   :  { %v29_v8 = vmul.f32 1.442695, %v28_v7 }
  0x80   :  { %54 = vpow2.f32 %v29_v8 }
  0x86   :  { %v55_v9 = vpop.eup %54 }
  0x87   :  { %v31_v10 = vadd.f32 1.0, %v55_v9 }
  0x89   :  { %56 = vrcp.f32 %v31_v10  ;;  %v43_v14 = vand.u32 2147483648, %v31_v10  ;;  %v41_v16 = vand.u32 2147483647, %v31_v10  ;;  %vm37_vm2 = vweird.f32 %v31_v10 }
  0x8b   :  { %v44_v18 = vor.u32 1.1754944e-38, %v43_v14  ;;  %vm42_vm5 = vcmp.eq.f32.partialorder %v41_v16, 8.507059e+37 }
  0x8f   :  { %v57_v11 = vpop.eup %56 }
  0x90   :  { %v33_v12 = vmul.f32 %v57_v11, %v31_v10  ;;  %vm38_vm1 = vweird.f32 %v57_v11 }
  0x91   :  { %vm39_vm3 = vmor %vm37_vm2, %vm38_vm1 }
  0x92   :  { %v34_v13 = vsub.f32 1.0, %v33_v12 }
  0x94   :  { %v35_v15 = vmul.f32 %v57_v11, %v34_v13 }
  0x96   :  { %v36_v17 = vadd.f32 %v57_v11, %v35_v15 }
  0x98   :  { %v40_v19 = vsel %vm39_vm3, %v57_v11, %v36_v17 }
  0x99   :  { %v45_v20 = vsel %vm42_vm5, %v44_v18, %v40_v19 }
  0x9a   :  { %48 = vst.msk [vmem:[%s93_s3] sm:$0xff] %vm47_vm4, %v45_v20 }

</bundles_post_ra>
